<compile_context>
chip_gen: v7x
topology: tpu7x:2x2x1
jax: 0.10.0
libtpu: 0.0.40
codegen_flags: <defaults>
</compile_context>

<pallas_src>
import jax
import jax.numpy as jnp
from jax.experimental import pallas as pl
from jax.experimental.pallas import tpu as pltpu


# ----------------------------------------------------------------------------
# Fused merged-chain kernel:
#   out1  = tanh(x  @ W1a + b1a) @ W2a + b2a          (model 1, latent output)
#   out2T = (tanh(out1 @ W1p + b1p) . w2p) + b2p       (model 2, scalar readout,
#                                                       written as a (1, tm) row)
# ----------------------------------------------------------------------------
def _merged_chain_kernel(x_ref, w1a_ref, b1a_ref, w2a_ref, b2a_ref,
                         w1p_ref, b1p_ref, w2pT_ref, b2p_ref,
                         out1_ref, out2T_ref):
    f32 = jnp.float32
    cd = w1a_ref.dtype                       # MXU input dtype (bf16 or f32)

    # ---- model 1: "AutoEncoder"-style 2-layer MLP ----
    x = x_ref[...]
    h1 = jnp.tanh(jnp.dot(x, w1a_ref[...], preferred_element_type=f32)
                  + b1a_ref[...])
    y1 = (jnp.dot(h1.astype(cd), w2a_ref[...], preferred_element_type=f32)
          + b2a_ref[...])
    out1_ref[...] = y1.astype(out1_ref.dtype)

    # ---- model 2: "PytorchPotentials"-style 2-layer MLP, scalar readout ----
    h2 = jnp.tanh(jnp.dot(y1.astype(cd), w1p_ref[...],
                          preferred_element_type=f32) + b1p_ref[...])
    # Lane-dense readout: contract the hidden dim of (1,H2) with (tm,H2),
    # giving a (1, tm) row -> unmasked 128-lane store; avoids a (tm,32)x(32,1)
    # MXU matmul whose result tile has only one useful lane.
    y2T = jax.lax.dot_general(
        w2pT_ref[...], h2.astype(cd),
        dimension_numbers=(((1,), (1,)), ((), ())),
        preferred_element_type=f32) + b2p_ref[...]
    out2T_ref[...] = y2T.astype(out2T_ref.dtype)


def merged_chain_forward(x, params_ae, params_pot, *, tm=512,
                         compute_dtype=jnp.bfloat16):
    """Fused forward for the canonical 2-model ml4chem merger chain."""
    w1a, b1a, w2a, b2a = params_ae
    w1p, b1p, w2p, b2p = params_pot
    N, D = x.shape
    H1 = w1a.shape[1]
    Dm = w2a.shape[1]
    H2 = w1p.shape[1]
    O = w2p.shape[1]
    assert O == 1, "fused chain kernel assumes a scalar (energy) readout"

    # Batch tile: multiple of 128 (lane rule for the transposed readout block)
    # unless a single full-size block covers the whole batch.
    if tm >= N:
        tm = N
    else:
        tm = max(128, (tm // 128) * 128)
    grid = (pl.cdiv(N, tm),)

    cd = jnp.dtype(compute_dtype)
    x_c = x.astype(cd)
    w1a_c = w1a.astype(cd)
    w2a_c = w2a.astype(cd)
    w1p_c = w1p.astype(cd)
    w2pT_c = jnp.reshape(w2p, (1, H2)).astype(cd)     # (H2,1) column -> (1,H2) row

    # VMEM budget: double-buffered x / out1 / out2T streams + resident weights,
    # plus headroom; capped at 64 MiB (v7x physical VMEM).
    elt = cd.itemsize
    weight_bytes = (D * H1 + H1 * Dm + Dm * H2 + H2) * elt \
        + (H1 + Dm + H2 + 1) * 4
    stream_bytes = tm * (D * elt + Dm * 4 + 4)
    vmem_limit = int(min(max(2 * (weight_bytes + stream_bytes) + (4 << 20),
                             32 << 20), 64 << 20))

    cost = pl.CostEstimate(
        flops=2 * N * (D * H1 + H1 * Dm + Dm * H2 + H2 * O),
        transcendentals=N * (H1 + H2),
        bytes_accessed=N * D * elt + weight_bytes + N * Dm * 4 + N * 4)

    def wspec(shape):
        return pl.BlockSpec(shape, lambda i: (0, 0))

    out1, out2T = pl.pallas_call(
        _merged_chain_kernel,
        out_shape=(jax.ShapeDtypeStruct((N, Dm), jnp.float32),
                   jax.ShapeDtypeStruct((1, N), jnp.float32)),
        grid=grid,
        in_specs=[
            pl.BlockSpec((tm, D), lambda i: (i, 0)),   # x tile (streamed)
            wspec((D, H1)), wspec((1, H1)),            # W1a, b1a (resident)
            wspec((H1, Dm)), wspec((1, Dm)),           # W2a, b2a
            wspec((Dm, H2)), wspec((1, H2)),           # W1p, b1p
            wspec((1, H2)), wspec((1, 1)),             # w2p^T, b2p
        ],
        out_specs=(pl.BlockSpec((tm, Dm), lambda i: (i, 0)),   # latent output
                   pl.BlockSpec((1, tm), lambda i: (0, i))),   # lane-dense energies
        compiler_params=pltpu.CompilerParams(
            dimension_semantics=("parallel",),
            vmem_limit_bytes=vmem_limit),
        cost_estimate=cost,
    )(x_c, w1a_c, b1a, w2a_c, b2a, w1p_c, b1p, w2pT_c, b2p)

    return out1, out2T.T                               # (N, Dm), (N, 1)


# ----------------------------------------------------------------------------
# Generic single-model 2-layer MLP kernel (fallback / non-chained inputs).
# ----------------------------------------------------------------------------
def _mlp2_kernel(x_ref, w1_ref, b1_ref, w2_ref, b2_ref, o_ref):
    f32 = jnp.float32
    cd = w1_ref.dtype
    h = jnp.tanh(jnp.dot(x_ref[...], w1_ref[...], preferred_element_type=f32)
                 + b1_ref[...])
    o_ref[...] = (jnp.dot(h.astype(cd), w2_ref[...], preferred_element_type=f32)
                  + b2_ref[...]).astype(o_ref.dtype)


def mlp2_forward(x, w1, b1, w2, b2, *, tm=512, compute_dtype=jnp.bfloat16):
    N, D = x.shape
    H = w1.shape[1]
    O = w2.shape[1]
    if tm >= N:
        tm = N
    else:
        tm = max(8, (tm // 8) * 8)
    cd = jnp.dtype(compute_dtype)
    return pl.pallas_call(
        _mlp2_kernel,
        out_shape=jax.ShapeDtypeStruct((N, O), jnp.float32),
        grid=(pl.cdiv(N, tm),),
        in_specs=[pl.BlockSpec((tm, D), lambda i: (i, 0)),
                  pl.BlockSpec((D, H), lambda i: (0, 0)),
                  pl.BlockSpec((1, H), lambda i: (0, 0)),
                  pl.BlockSpec((H, O), lambda i: (0, 0)),
                  pl.BlockSpec((1, O), lambda i: (0, 0))],
        out_specs=pl.BlockSpec((tm, O), lambda i: (i, 0)),
        compiler_params=pltpu.CompilerParams(
            dimension_semantics=("parallel",),
            vmem_limit_bytes=32 * 1024 * 1024),
    )(x.astype(cd), w1.astype(cd), b1, w2.astype(cd), b2)


# ----------------------------------------------------------------------------
# Model / merger wrappers (stand-ins for ml4chem AutoEncoder / PytorchPotentials)
# ----------------------------------------------------------------------------
class PallasMLP2:
    """2-layer MLP (tanh hidden, linear readout) — the ml4chem building block."""

    def __init__(self, name, w1, b1, w2, b2):
        self._name = name
        self.params = (w1, b1, w2, b2)

    def name(self):
        return self._name

    def __call__(self, x, *, tm=512, compute_dtype=jnp.bfloat16):
        return mlp2_forward(x, *self.params, tm=tm, compute_dtype=compute_dtype)


class ModelMerger:
    """JAX/Pallas port of ml4chem ModelMerger.forward.

    Models run sequentially; a None entry in X plays the role of the
    inspect.ismethod() placeholder in the original, meaning that model consumes
    the previous model's output.
    """
    # TODO(synk): the original 'PytorchPotentials' branch calls
    # X[i](OrderedDict(X[i-1]), purpose='inference') — a host-side feature-space
    # construction with no Pallas equivalent; we chain on the previous model's
    # tensor output instead.

    NAME = "Merged"
    autoencoders = ["AutoEncoder", "VAE"]

    @classmethod
    def name(cls):
        return cls.NAME

    def __init__(self, models):
        self.models = models

    def forward(self, X, models, *, tm=512, compute_dtype=jnp.bfloat16):
        # Hot path: the canonical 2-model chain (AutoEncoder -> potential with
        # scalar readout) runs as ONE fused Pallas kernel — no HBM round-trip
        # for the latent intermediate, one launch instead of two.
        if (len(models) == 2 and X[1] is None
                and hasattr(models[0], "params") and hasattr(models[1], "params")
                and models[1].params[2].shape[1] == 1):
            out1, out2 = merged_chain_forward(
                X[0], models[0].params, models[1].params,
                tm=tm, compute_dtype=compute_dtype)
            return [out1, out2]

        # Generic fallback: sequential per-model kernels (original semantics).
        outputs = []
        for i, model in enumerate(models):
            x = X[i]
            if x is None:
                x = outputs[i - 1]
            outputs.append(model(x, tm=tm, compute_dtype=compute_dtype))
        return outputs


# ----------------------------------------------------------------------------
# Demo / test
# ----------------------------------------------------------------------------
def _init_linear(key, fan_in, fan_out):
    kw, kb = jax.random.split(key)
    scale = 1.0 / jnp.sqrt(jnp.float32(fan_in))
    w = jax.random.uniform(kw, (fan_in, fan_out), jnp.float32, -scale, scale)
    b = jax.random.uniform(kb, (1, fan_out), jnp.float32, -scale, scale)
    return w, b


def _ref_mlp2(x, w1, b1, w2, b2):
    return jnp.tanh(x @ w1 + b1) @ w2 + b2


if __name__ == "__main__":
    key = jax.random.PRNGKey(0)
    k_x, k1, k2, k3, k4 = jax.random.split(key, 5)

    # AutoEncoder-style 32 -> 32 -> 16 feeding a potentials-style 16 -> 32 -> 1.
    N, D_IN, H1, D_MID, H2, D_OUT = 256, 32, 32, 16, 32, 1
    TM = 128            # 2 grid steps -> both v7x TensorCores get work

    w1a, b1a = _init_linear(k1, D_IN, H1)
    w2a, b2a = _init_linear(k2, H1, D_MID)
    model1 = PallasMLP2("AutoEncoder", w1a, b1a, w2a, b2a)

    w1p, b1p = _init_linear(k3, D_MID, H2)
    w2p, b2p = _init_linear(k4, H2, D_OUT)
    model2 = PallasMLP2("PytorchPotentials", w1p, b1p, w2p, b2p)

    merger = ModelMerger([model1, model2])
    x0 = jax.random.normal(k_x, (N, D_IN), jnp.float32)
    X = [x0, None]      # None == "method" placeholder -> chain from model 1

    # Pure-JAX f32 reference.
    ref1 = _ref_mlp2(x0, w1a, b1a, w2a, b2a)
    ref2 = _ref_mlp2(ref1, w1p, b1p, w2p, b2p)

    # 1) f32 MXU-input path: tight match against the XLA reference.
    out_f32 = merger.forward(X, merger.models, tm=TM, compute_dtype=jnp.float32)
    out_f32 = [jax.block_until_ready(o) for o in out_f32]
    assert out_f32[0].shape == (N, D_MID) and out_f32[1].shape == (N, D_OUT)
    assert jnp.allclose(out_f32[0], ref1, atol=1e-5)
    assert jnp.allclose(out_f32[1], ref2, atol=1e-5)

    # 2) Default bf16 MXU-input path (f32 accumulation / tanh / biases):
    #    tolerance covers bf16 input rounding (~0.4% relative per operand).
    out_bf16 = merger.forward(X, merger.models, tm=TM)
    out_bf16 = [jax.block_until_ready(o) for o in out_bf16]
    assert out_bf16[0].shape == (N, D_MID) and out_bf16[1].shape == (N, D_OUT)
    assert jnp.allclose(out_bf16[0], ref1, atol=5e-2)
    assert jnp.allclose(out_bf16[1], ref2, atol=5e-2)

    # 3) Exercise the generic (non-fused, non-chained) fallback path once.
    out_seq = merger.forward([x0, ref1], merger.models, tm=TM,
                             compute_dtype=jnp.float32)
    out_seq = [jax.block_until_ready(o) for o in out_seq]
    assert jnp.allclose(out_seq[0], ref1, atol=1e-5)
    assert jnp.allclose(out_seq[1], ref2, atol=1e-5)

    print("KERNEL_OK")
</pallas_src>

<mosaic_0001>
module attributes {stable_mosaic.version = 11 : i64} {
  func.func @_merged_chain_kernel(%arg0: i32, %arg1: memref<128x32xf32, #tpu.memory_space<vmem>>, %arg2: memref<32x32xf32, #tpu.memory_space<vmem>>, %arg3: memref<1x32xf32, #tpu.memory_space<vmem>>, %arg4: memref<32x16xf32, #tpu.memory_space<vmem>>, %arg5: memref<1x16xf32, #tpu.memory_space<vmem>>, %arg6: memref<16x32xf32, #tpu.memory_space<vmem>>, %arg7: memref<1x32xf32, #tpu.memory_space<vmem>>, %arg8: memref<1x32xf32, #tpu.memory_space<vmem>>, %arg9: memref<1x1xf32, #tpu.memory_space<vmem>>, %arg10: memref<128x16xf32, #tpu.memory_space<vmem>>, %arg11: memref<1x128xf32, #tpu.memory_space<vmem>>) attributes {dimension_semantics = [#tpu.dimension_semantics<parallel>], iteration_bounds = array<i64: 2>, scalar_prefetch = 0 : i64, scratch_operands = 0 : i64, tpu.core_type = #tpu.core_type<tc>, window_params = [{transform_indices = @transform_0, window_bounds = array<i64: 128, 32>}, {pipeline_mode = #tpu.pipeline_mode<synchronous>, transform_indices = @transform_1, window_bounds = array<i64: 32, 32>}, {pipeline_mode = #tpu.pipeline_mode<synchronous>, transform_indices = @transform_2, window_bounds = array<i64: 1, 32>}, {pipeline_mode = #tpu.pipeline_mode<synchronous>, transform_indices = @transform_3, window_bounds = array<i64: 32, 16>}, {pipeline_mode = #tpu.pipeline_mode<synchronous>, transform_indices = @transform_4, window_bounds = array<i64: 1, 16>}, {pipeline_mode = #tpu.pipeline_mode<synchronous>, transform_indices = @transform_5, window_bounds = array<i64: 16, 32>}, {pipeline_mode = #tpu.pipeline_mode<synchronous>, transform_indices = @transform_6, window_bounds = array<i64: 1, 32>}, {pipeline_mode = #tpu.pipeline_mode<synchronous>, transform_indices = @transform_7, window_bounds = array<i64: 1, 32>}, {pipeline_mode = #tpu.pipeline_mode<synchronous>, transform_indices = @transform_8, window_bounds = array<i64: 1, 1>}, {transform_indices = @transform_9, window_bounds = array<i64: 128, 16>}, {transform_indices = @transform_10, window_bounds = array<i64: 1, 128>}]} {
    %c0 = arith.constant 0 : index
    %c0_0 = arith.constant 0 : index
    %0 = vector.load %arg1[%c0, %c0_0] : memref<128x32xf32, #tpu.memory_space<vmem>>, vector<128x32xf32>
    %c0_1 = arith.constant 0 : index
    %c0_2 = arith.constant 0 : index
    %1 = vector.load %arg2[%c0_1, %c0_2] : memref<32x32xf32, #tpu.memory_space<vmem>>, vector<32x32xf32>
    %cst = arith.constant dense<0.000000e+00> : vector<128x32xf32>
    %2 = tpu.matmul %0, %1, %cst {dimension_numbers = #tpu.dot_dimension_numbers<[1], [0], [0], [1], [0, 0, 1, 1], [], []>} : vector<128x32xf32>, vector<32x32xf32>, vector<128x32xf32> -> vector<128x32xf32>
    %c0_3 = arith.constant 0 : index
    %c0_4 = arith.constant 0 : index
    %3 = vector.load %arg3[%c0_3, %c0_4] : memref<1x32xf32, #tpu.memory_space<vmem>>, vector<1x32xf32>
    %4 = vector.broadcast %3 : vector<1x32xf32> to vector<128x32xf32>
    %5 = arith.addf %2, %4 : vector<128x32xf32>
    %6 = math.tanh %5 : vector<128x32xf32>
    %c0_5 = arith.constant 0 : index
    %c0_6 = arith.constant 0 : index
    %7 = vector.load %arg4[%c0_5, %c0_6] : memref<32x16xf32, #tpu.memory_space<vmem>>, vector<32x16xf32>
    %cst_7 = arith.constant dense<0.000000e+00> : vector<128x16xf32>
    %8 = tpu.matmul %6, %7, %cst_7 {dimension_numbers = #tpu.dot_dimension_numbers<[1], [0], [0], [1], [0, 0, 1, 1], [], []>} : vector<128x32xf32>, vector<32x16xf32>, vector<128x16xf32> -> vector<128x16xf32>
    %c0_8 = arith.constant 0 : index
    %c0_9 = arith.constant 0 : index
    %9 = vector.load %arg5[%c0_8, %c0_9] : memref<1x16xf32, #tpu.memory_space<vmem>>, vector<1x16xf32>
    %10 = vector.broadcast %9 : vector<1x16xf32> to vector<128x16xf32>
    %11 = arith.addf %8, %10 : vector<128x16xf32>
    %c0_10 = arith.constant 0 : index
    %c0_11 = arith.constant 0 : index
    %12 = vector.load %arg10[%c0_10, %c0_11] : memref<128x16xf32, #tpu.memory_space<vmem>>, vector<128x16xf32>
    tpu.vector_store %arg10[%c0_10, %c0_11], %11 {strides = array<i32>} : memref<128x16xf32, #tpu.memory_space<vmem>>, vector<128x16xf32>,
    %c0_12 = arith.constant 0 : index
    %c0_13 = arith.constant 0 : index
    %13 = vector.load %arg6[%c0_12, %c0_13] : memref<16x32xf32, #tpu.memory_space<vmem>>, vector<16x32xf32>
    %cst_14 = arith.constant dense<0.000000e+00> : vector<128x32xf32>
    %14 = tpu.matmul %11, %13, %cst_14 {dimension_numbers = #tpu.dot_dimension_numbers<[1], [0], [0], [1], [0, 0, 1, 1], [], []>} : vector<128x16xf32>, vector<16x32xf32>, vector<128x32xf32> -> vector<128x32xf32>
    %c0_15 = arith.constant 0 : index
    %c0_16 = arith.constant 0 : index
    %15 = vector.load %arg7[%c0_15, %c0_16] : memref<1x32xf32, #tpu.memory_space<vmem>>, vector<1x32xf32>
    %16 = vector.broadcast %15 : vector<1x32xf32> to vector<128x32xf32>
    %17 = arith.addf %14, %16 : vector<128x32xf32>
    %18 = math.tanh %17 : vector<128x32xf32>
    %c0_17 = arith.constant 0 : index
    %c0_18 = arith.constant 0 : index
    %19 = vector.load %arg8[%c0_17, %c0_18] : memref<1x32xf32, #tpu.memory_space<vmem>>, vector<1x32xf32>
    %cst_19 = arith.constant dense<0.000000e+00> : vector<1x128xf32>
    %20 = tpu.matmul %19, %18, %cst_19 {dimension_numbers = #tpu.dot_dimension_numbers<[1], [1], [0], [0], [0, 0, 1, 0], [], []>} : vector<1x32xf32>, vector<128x32xf32>, vector<1x128xf32> -> vector<1x128xf32>
    %c0_20 = arith.constant 0 : index
    %c0_21 = arith.constant 0 : index
    %21 = vector.load %arg9[%c0_20, %c0_21] : memref<1x1xf32, #tpu.memory_space<vmem>>, vector<1x1xf32>
    %22 = vector.broadcast %21 : vector<1x1xf32> to vector<1x128xf32>
    %23 = arith.addf %20, %22 : vector<1x128xf32>
    %c0_22 = arith.constant 0 : index
    %c0_23 = arith.constant 0 : index
    %24 = vector.load %arg11[%c0_22, %c0_23] : memref<1x128xf32, #tpu.memory_space<vmem>>, vector<1x128xf32>
    tpu.vector_store %arg11[%c0_22, %c0_23], %23 {strides = array<i32>} : memref<1x128xf32, #tpu.memory_space<vmem>>, vector<1x128xf32>,
    return
  }
  func.func @transform_0(%arg0: i32) -> (i32, i32) {
    %c0_i32 = arith.constant 0 : i32
    %c0_i32_0 = arith.constant 0 : i32
    return %arg0, %c0_i32 : i32, i32
  }
  func.func @transform_1(%arg0: i32) -> (i32, i32) {
    %c0_i32 = arith.constant 0 : i32
    %c0_i32_0 = arith.constant 0 : i32
    %c0_i32_1 = arith.constant 0 : i32
    return %c0_i32, %c0_i32_0 : i32, i32
  }
  func.func @transform_2(%arg0: i32) -> (i32, i32) {
    %c0_i32 = arith.constant 0 : i32
    %c0_i32_0 = arith.constant 0 : i32
    %c0_i32_1 = arith.constant 0 : i32
    return %c0_i32, %c0_i32_0 : i32, i32
  }
  func.func @transform_3(%arg0: i32) -> (i32, i32) {
    %c0_i32 = arith.constant 0 : i32
    %c0_i32_0 = arith.constant 0 : i32
    %c0_i32_1 = arith.constant 0 : i32
    return %c0_i32, %c0_i32_0 : i32, i32
  }
  func.func @transform_4(%arg0: i32) -> (i32, i32) {
    %c0_i32 = arith.constant 0 : i32
    %c0_i32_0 = arith.constant 0 : i32
    %c0_i32_1 = arith.constant 0 : i32
    return %c0_i32, %c0_i32_0 : i32, i32
  }
  func.func @transform_5(%arg0: i32) -> (i32, i32) {
    %c0_i32 = arith.constant 0 : i32
    %c0_i32_0 = arith.constant 0 : i32
    %c0_i32_1 = arith.constant 0 : i32
    return %c0_i32, %c0_i32_0 : i32, i32
  }
  func.func @transform_6(%arg0: i32) -> (i32, i32) {
    %c0_i32 = arith.constant 0 : i32
    %c0_i32_0 = arith.constant 0 : i32
    %c0_i32_1 = arith.constant 0 : i32
    return %c0_i32, %c0_i32_0 : i32, i32
  }
  func.func @transform_7(%arg0: i32) -> (i32, i32) {
    %c0_i32 = arith.constant 0 : i32
    %c0_i32_0 = arith.constant 0 : i32
    %c0_i32_1 = arith.constant 0 : i32
    return %c0_i32, %c0_i32_0 : i32, i32
  }
  func.func @transform_8(%arg0: i32) -> (i32, i32) {
    %c0_i32 = arith.constant 0 : i32
    %c0_i32_0 = arith.constant 0 : i32
    %c0_i32_1 = arith.constant 0 : i32
    return %c0_i32, %c0_i32_0 : i32, i32
  }
  func.func @transform_9(%arg0: i32) -> (i32, i32) {
    %c0_i32 = arith.constant 0 : i32
    %c0_i32_0 = arith.constant 0 : i32
    return %arg0, %c0_i32 : i32, i32
  }
  func.func @transform_10(%arg0: i32) -> (i32, i32) {
    %c0_i32 = arith.constant 0 : i32
    %c0_i32_0 = arith.constant 0 : i32
    return %c0_i32, %arg0 : i32, i32
  }
}

</mosaic_0001>

<bundles_post_ra>
// kernel: tpu_custom_call.1
= control target key start
LH: loop header
LB: loop body
LE: loop exit
PB: predicated region body
PF: predicated region fallthrough
CT: control target
= control target key end

     0   :  { %s2172_s0 = inlined_call_operand.vmem [shape: f32[256,32], index: 0, kind: input, shape index: {}]   ;;  %s2173_s1 = inlined_call_operand.vmem [shape: f32[32,32], index: 1, kind: input, shape index: {}]   ;;  %s2174_s2 = inlined_call_operand.vmem [shape: f32[1,32], index: 2, kind: input, shape index: {}]   ;;  %s2175_s3 = inlined_call_operand.vmem [shape: f32[32,16], index: 3, kind: input, shape index: {}]   ;;  %s2176_s4 = inlined_call_operand.vmem [shape: f32[1,16], index: 4, kind: input, shape index: {}]   ;;  %s2177_s5 = inlined_call_operand.vmem [shape: f32[16,32], index: 5, kind: input, shape index: {}]   ;;  %s2178_s6 = inlined_call_operand.vmem [shape: f32[1,32], index: 6, kind: input, shape index: {}]   ;;  %s2179_s7 = inlined_call_operand.vmem [shape: f32[1,32], index: 7, kind: input, shape index: {}]   ;;  %s2180_s8 = inlined_call_operand.<no memory space> [shape: f32[1,1], index: 8, kind: input, shape index: {}]   ;;  %s2181_s9 = inlined_call_operand.vmem [shape: f32[256,16], index: 9, kind: output, shape index: {0}]   ;;  %s2182_s10 = inlined_call_operand.hbm [shape: f32[1,256], index: 10, kind: output, shape index: {1}]  }
   0x1   :  { %v16_v0 = vstv %s2180_s8 }
   0x2   :  { %17 = vst [vmem:[#allocation2] sm:$0x1] %v16_v0 }
   0x3   :  { %18 = vsyncpa [#allocation4], 0 }
   0x4   :  { %20 = vsyncpa [#allocation4 + $0x1], 0  ;;  %s1854_s15 = smov 0   ;;  %s1856_s16 = smov 0  }
   0x5   :  { %s1858_s17 = smov 0   ;;  %s1860_s18 = smov 0  }
   0x6 LB: > { %s1285_s8 = sadd.s32 4294967295, %s1789_s18   ;;  %s1286_s19 = sadd.s32 4294967294, %s1789_s18   ;;  %s1789_s18 = sphi %s1860_s18, %s2190_s18   ;;  %s1785_s17 = sphi %s1858_s17, %s2189_s17   ;;  %s1781_s16 = sphi %s1856_s16, %s2188_s16   ;;  %s1777_s15 = sphi %s1854_s15, %s2187_s15  }
   0x7   : > { %s1877_s20 = sadd.s32 1, %s1789_s18   ;;  %s253_s21 = sadd.s32 1, %s1785_s17 }
   0x8   : > { %s250_s22 = ssub.s32 %s1789_s18, %s1877_s20  ;;  %p263_p0 = scmp.ne.s32.totalorder %s1785_s17, %s1781_s16 }
   0x9   : > { %p251_p1 = scmp.eq.s32.totalorder %s250_s22, 0  ;;  %p264_p2 = scmp.eq.s32.totalorder %s1285_s8, 1 }
   0xa   : > { %p269_p3 = scmp.ne.s32.totalorder %s1781_s16, %s1777_s15  ;;  %p270_p4 = scmp.eq.s32.totalorder %s1286_s19, 1 }
   0xb   : > { %s1887_s23 = scalar_select %p251_p1, %s1785_s17, %s253_s21  }
   0xc   : > { %p1889_p5 = por %p264_p2, %p263_p0  ;;  %p1893_p6 = por %p270_p4, %p269_p3 }
   0xd   : > { %p1289_p7 = scmp.ge.s32.totalorder %s1789_s18, 1  ;;  %p321_p8 = scmp.lt.s32.totalorder %s1789_s18, 3 }
   0xf   : > { %p322_p9 = pnand %p1289_p7, %p321_p8 }
  0x10   : > { %v391_v1 = vld [vmem:[%s2173_s1] sm:$0xff] (!%p322_p9)  ;;  %v392_v2 = vld [vmem:[%s2173_s1 + $0x8] sm:$0xff] (!%p322_p9)  ;;  %v393_v3 = vld [vmem:[%s2173_s1 + $0x10] sm:$0xff] (!%p322_p9)  ;;  %s1908_s12 = sshll.u32 (!%p322_p9), %s1285_s8, 4  ;;  %vm402_vm0 = vcmask (!%p322_p9), 261120   ;;  %vm816_vm1 = vcmask (!%p322_p9), 130048  }
  0x11   : > { %325 = sbr.rel (%p322_p9) target bundleno = 992 (0x3e0), region = 56  ;;  %v1567_v4 = vpack.c.bf16 (!%p322_p9), %v392_v2, %v391_v1  ;;  %v394_v5 = vld [vmem:[%s2173_s1 + $0x18] sm:$0xff] (!%p322_p9)  ;;  %p364_p10 = scmp.lt.s32.totalorder (!%p322_p9), %s1908_s12, 31  ;;  %v612_v23 = vld [vmem:[%s2175_s3] sm:$0xff] (!%p322_p9)  ;;  %v613_v24 = vld [vmem:[%s2175_s3 + $0x8] sm:$0xff] (!%p322_p9)  ;;  %vm1792_vm2 = vmmov (!%p322_p9), 0  }
  0x12   : > { %v1571_v6 = vpack.c.bf16 (!%p322_p9), %v394_v5, %v393_v3  ;;  %v1575_v25 = vpack.c.bf16 (!%p322_p9), %v613_v24, %v612_v23  ;;  %v614_v26 = vld [vmem:[%s2175_s3 + $0x10] sm:$0xff] (!%p322_p9)  ;;  %v615_v27 = vld [vmem:[%s2175_s3 + $0x18] sm:$0xff] (!%p322_p9)  ;;  %v833_v29 = vld [vmem:[%s2177_s5] sm:$0xff] (!%p322_p9)  ;;  %s361_s28 = sand.u32 (!%p322_p9), 1, %s1781_s16   ;;  %s2130_s14 = scalar_lea.hbm (!%p322_p9), %s2182_s10, %s1908_s12 }
  0x13   : > { %1568 = vmatprep.subr.bf16.mxu0 (!%p322_p9), %v1567_v4  ;;  %v1579_v28 = vpack.c.bf16 (!%p322_p9), %v615_v27, %v614_v26  ;;  %v834_v30 = vld [vmem:[%s2177_s5 + $0x8] sm:$0xff] (!%p322_p9)  ;;  %v1978_v32 = vld [vmem:[%s2174_s2] ss:$0 sm:$0xff] (!%p322_p9)  ;;  %vm2085_vm3 = vmpackc.low (!%p322_p9), %vm402_vm0, %vm402_vm0  ;;  %s362_s29 = scalar_lea.vmem (!%p322_p9), [#allocation3], %s361_s28  ;;  %s1190_s8 = scalar_lea.sflag (!%p322_p9), [#allocation4], %s361_s28 }
  0x14   : > { %1570 = vmatpush3.bf16.msra.mxu0 (!%p322_p9), %v1567_v4  ;;  %1576 = vmatprep.subr.bf16.mxu1 (!%p322_p9), %v1575_v25  ;;  %v1583_v31 = vpack.c.bf16 (!%p322_p9), %v834_v30, %v833_v29  ;;  %s1206_s30 = sshll.u32 (!%p322_p9), %s362_s29, 4  ;;  %s2132_s30 = int_to_ptr.vmem [resolvable:$true] %s1206_s30 }
  0x15   : > { %1572 = vmatprep.subr.bf16.mxu0 (!%p322_p9), %v1571_v6  ;;  %1578 = vmatpush3.bf16.msra.mxu1 (!%p322_p9), %v1575_v25 }
  0x16   : > { %1580 = vmatprep.subr.bf16.mxu1 (!%p322_p9), %v1579_v28 }
  0x18   : > { %s1915_s19 = scalar_select %p364_p10, %s1908_s12, 31  ;;  %1574 = vmatpush3.bf16.msra.mxu0 %v1571_v6 }
  0x19   : > { %1582 = vmatpush3.bf16.msra.mxu1 %v1579_v28  ;;  %1584 = vmatprep.subr.bf16.mxu0 %v1583_v31 }
  0x1a   : > { %s1291_s21 = sshll.u32 %s1915_s19, 3  ;;  %s1795_s19 = smov [#allocation3]  }
  0x1b   : > { %s1923_s26 = scalar_lea.vmem %s2172_s0, %s1291_s21  ;;  %s2020_s22 = scalar_lea.vmem %s2181_s9, %s1291_s21 }
  0x1c   : > { %v375_v7 = vld [vmem:[%s1923_s26] sm:$0xff]  ;;  %v376_v8 = vld [vmem:[%s1923_s26 + $0x8] sm:$0xff]  ;;  %v377_v9 = vld [vmem:[%s1923_s26 + $0x10] sm:$0xff]  ;;  %s1731_s21 = sshll.u32 %s1795_s19, 4  ;;  %s1732_s21 = int_to_ptr.vmem [resolvable:$false] %s1731_s21 }
  0x1d   : > { %1448 = vmatprep.mubr.msk.f32.mxu0 %vm402_vm0, %v375_v7  ;;  %v378_v10 = vld [vmem:[%s1923_s26 + $0x18] sm:$0xff]  ;;  %v379_v11 = vld [vmem:[%s1923_s26 + $0x20] sm:$0xff]  ;;  %v380_v12 = vld [vmem:[%s1923_s26 + $0x28] sm:$0xff]  ;;  %p1734_p0 = scmp.lt.s32.totalorder %s2132_s30, %s1732_s21 }
  0x1e   : > { %1449 = vmatmul.mubr.msk.f32.vlgmr.msra.gmra.mrb[0].mxu0 %vm402_vm0, %v376_v8  ;;  %v381_v13 = vld [vmem:[%s1923_s26 + $0x30] sm:$0xff]  ;;  %v382_v14 = vld [vmem:[%s1923_s26 + $0x38] sm:$0xff]  ;;  %v383_v15 = vld [vmem:[%s1923_s26 + $0x40] sm:$0xff] }
  0x1f   : > { %1451 = vmatprep.mubr.msk.f32.mxu0 %vm402_vm0, %v377_v9  ;;  %v384_v16 = vld [vmem:[%s1923_s26 + $0x48] sm:$0xff]  ;;  %v385_v17 = vld [vmem:[%s1923_s26 + $0x50] sm:$0xff]  ;;  %v386_v18 = vld [vmem:[%s1923_s26 + $0x58] sm:$0xff]  ;;  %1586 = vmatpush3.bf16.msra.mxu0 %v1583_v31 }
  0x20   : > { %v387_v19 = vld [vmem:[%s1923_s26 + $0x60] sm:$0xff]  ;;  %v388_v20 = vld [vmem:[%s1923_s26 + $0x68] sm:$0xff]  ;;  %v389_v21 = vld [vmem:[%s1923_s26 + $0x70] sm:$0xff] }
  0x21   : > { %v390_v22 = vld [vmem:[%s1923_s26 + $0x78] sm:$0xff]  ;;  %s1733_s26 = scalar_lea.vmem %s1732_s21, 32 }
  0x22   : > { %1452 = vmatmul.mubr.msk.f32.gmra.mrb[2].mxu0 %vm402_vm0, %v378_v10 }
  0x23   : > { %1454 = vmatprep.mubr.msk.f32.mxu0 %vm402_vm0, %v379_v11 }
  0x26   : > { %1455 = vmatmul.mubr.msk.f32.gmra.mrb[4].mxu0 %vm402_vm0, %v380_v12 }
  0x27   : > { %1457 = vmatprep.mubr.msk.f32.mxu0 %vm402_vm0, %v381_v13 }
  0x2a   : > { %1458 = vmatmul.mubr.msk.f32.gmra.mrb[6].mxu0 %vm402_vm0, %v382_v14 }
  0x2b   : > { %1460 = vmatprep.mubr.msk.f32.mxu0 %vm402_vm0, %v383_v15 }
  0x2e   : > { %1461 = vmatmul.mubr.msk.f32.gmra.mrb[8].mxu0 %vm402_vm0, %v384_v16 }
  0x2f   : > { %1463 = vmatprep.mubr.msk.f32.mxu0 %vm402_vm0, %v385_v17  ;;  %v1311_v17 = vld [vmem:[%s2176_s4] ss:$0 sm:$0xff] }
  0x32   : > { %1464 = vmatmul.mubr.msk.f32.gmra.mrb[10].mxu0 %vm402_vm0, %v386_v18 }
  0x33   : > { %1466 = vmatprep.mubr.msk.f32.mxu0 %vm402_vm0, %v387_v19 }
  0x36   : > { %1467 = vmatmul.mubr.msk.f32.gmra.mrb[12].mxu0 %vm402_vm0, %v388_v20 }
  0x37   : > { %1469 = vmatprep.mubr.msk.f32.mxu0 %vm402_vm0, %v389_v21 }
  0x3a   : > { %1470 = vmatmul.mubr.msk.f32.gmra.mrb[14].mxu0 %vm402_vm0, %v390_v22 }
  0xf1   : > { %v1450_v33 = vpop.f32.mrb[0].mxu0 }
  0xf2   : > { %v523_v34 = vadd.f32 %v1450_v33, %v1978_v32  ;;  %v517_v35 = vpop.f32.mrb[1].mxu0 }
  0xf3   : > { %v518_v36 = vadd.f32 %v1978_v32, %v517_v35 }
  0xf5   : > { %1663 = vtanh.f32 %v518_v36  ;;  %v1453_v37 = vpop.f32.mrb[2].mxu0 }
  0xf6   : > { %1665 = vtanh.f32 %v523_v34  ;;  %v533_v38 = vadd.f32 %v1453_v37, %v1978_v32  ;;  %v527_v39 = vpop.f32.mrb[3].mxu0 }
  0xf7   : > { %v528_v40 = vadd.f32 %v1978_v32, %v527_v39 }
  0xf8   : > { %1667 = vtanh.f32 %v533_v38 }
  0xf9   : > { %1669 = vtanh.f32 %v528_v40  ;;  %v1456_v41 = vpop.f32.mrb[4].mxu0 }
  0xfa   : > { %v543_v42 = vadd.f32 %v1456_v41, %v1978_v32  ;;  %v537_v43 = vpop.f32.mrb[5].mxu0 }
  0xfb   : > { %v538_v44 = vadd.f32 %v1978_v32, %v537_v43 }
  0xfc   : > { %1671 = vtanh.f32 %v543_v42 }
  0xfd   : > { %1673 = vtanh.f32 %v538_v44  ;;  %v1459_v45 = vpop.f32.mrb[6].mxu0 }
  0xfe   : > { %v553_v46 = vadd.f32 %v1459_v45, %v1978_v32  ;;  %v547_v47 = vpop.f32.mrb[7].mxu0 }
  0xff   : > { %v1664_v48 = vpop.eup %1663  ;;  %v548_v49 = vadd.f32 %v1978_v32, %v547_v47 }
 0x100   : > { %v1666_v50 = vpop.eup %1665  ;;  %1480 = vmatprep.mubr.msk.f32.mxu1 %vm402_vm0, %v1664_v48  ;;  %1675 = vtanh.f32 %v553_v46 }
 0x101   : > { %1481 = vmatmul.mubr.msk.f32.vlgmr.msra.gmra.mrb[0].mxu1 %vm402_vm0, %v1666_v50  ;;  %1677 = vtanh.f32 %v548_v49  ;;  %v1462_v51 = vpop.f32.mrb[8].mxu0  ;;  %v1791_v50 = vmov 0.0|0.0  }
 0x102   : > { %v1668_v52 = vpop.eup %1667  ;;  %v563_v53 = vadd.f32 %v1462_v51, %v1978_v32  ;;  %v557_v54 = vpop.f32.mrb[9].mxu0  ;;  %1587 = vmatprep.subr.bf16.mxu1 %v1791_v50  ;;  %v1793_v51 = vmov 0.0  }
 0x103   : > { %v1670_v55 = vpop.eup %1669  ;;  %v558_v56 = vadd.f32 %v1978_v32, %v557_v54  ;;  %v2074_v54 = vld [vmem:[%s2178_s6] ss:$0 sm:$0xff] }
 0x104   : > { %1483 = vmatprep.mubr.msk.f32.mxu1 %vm402_vm0, %v1670_v55  ;;  %1679 = vtanh.f32 %v563_v53  ;;  %v1794_v53 = vmov 0  }
 0x105   : > { %1484 = vmatmul.mubr.msk.f32.gmra.mrb[2].mxu1 %vm402_vm0, %v1668_v52  ;;  %1681 = vtanh.f32 %v558_v56  ;;  %v1465_v57 = vpop.f32.mrb[10].mxu0  ;;  %v1052_v52 = vld [vmem:[#allocation2] sm:$0x1]  ;;  %1662 = vset.pattern.permute.xlu0 %v1794_v53 }
 0x106   : > { %v1672_v58 = vpop.eup %1671  ;;  %v573_v59 = vadd.f32 %v1465_v57, %v1978_v32  ;;  %v567_v60 = vpop.f32.mrb[11].mxu0  ;;  %1055 = vperm.xlu0 %1662, %v1052_v52  }
 0x107   : > { %v1674_v61 = vpop.eup %1673  ;;  %v568_v62 = vadd.f32 %v1978_v32, %v567_v60 }
 0x108   : > { %1486 = vmatprep.mubr.msk.f32.mxu1 %vm402_vm0, %v1674_v61  ;;  %1683 = vtanh.f32 %v573_v59 }
 0x109   : > { %1487 = vmatmul.mubr.msk.f32.gmra.mrb[4].mxu1 %vm402_vm0, %v1672_v58  ;;  %1685 = vtanh.f32 %v568_v62  ;;  %v1468_v63 = vpop.f32.mrb[12].mxu0 }
 0x10a   : > { %v1676_v0 = vpop.eup %1675  ;;  %v583_v1 = vadd.f32 %v1468_v63, %v1978_v32  ;;  %v577_v2 = vpop.f32.mrb[13].mxu0 }
 0x10b   : > { %v1678_v3 = vpop.eup %1677  ;;  %v578_v4 = vadd.f32 %v1978_v32, %v577_v2 }
 0x10c   : > { %1489 = vmatprep.mubr.msk.f32.mxu1 %vm402_vm0, %v1678_v3  ;;  %1687 = vtanh.f32 %v583_v1 }
 0x10d   : > { %1490 = vmatmul.mubr.msk.f32.gmra.mrb[6].mxu1 %vm402_vm0, %v1676_v0  ;;  %1689 = vtanh.f32 %v578_v4  ;;  %v1471_v5 = vpop.f32.mrb[14].mxu0 }
 0x10e   : > { %v1680_v6 = vpop.eup %1679  ;;  %v593_v7 = vadd.f32 %v1471_v5, %v1978_v32  ;;  %v587_v8 = vpop.f32.mrb[15].mxu0 }
 0x10f   : > { %v1682_v9 = vpop.eup %1681  ;;  %v588_v10 = vadd.f32 %v1978_v32, %v587_v8 }
 0x110   : > { %1492 = vmatprep.mubr.msk.f32.mxu1 %vm402_vm0, %v1682_v9  ;;  %1691 = vtanh.f32 %v593_v7 }
 0x111   : > { %1493 = vmatmul.mubr.msk.f32.gmra.mrb[8].mxu1 %vm402_vm0, %v1680_v6  ;;  %1693 = vtanh.f32 %v588_v10 }
 0x112   : > { %v1684_v11 = vpop.eup %1683 }
 0x113   : > { %v1686_v12 = vpop.eup %1685 }
 0x114   : > { %1495 = vmatprep.mubr.msk.f32.mxu1 %vm402_vm0, %v1686_v12 }
 0x115   : > { %1496 = vmatmul.mubr.msk.f32.gmra.mrb[10].mxu1 %vm402_vm0, %v1684_v11 }
 0x116   : > { %v1688_v13 = vpop.eup %1687 }
 0x117   : > { %v1690_v14 = vpop.eup %1689 }
 0x118   : > { %1498 = vmatprep.mubr.msk.f32.mxu1 %vm402_vm0, %v1690_v14 }
 0x119   : > { %1499 = vmatmul.mubr.msk.f32.gmra.mrb[12].mxu1 %vm402_vm0, %v1688_v13 }
 0x11a   : > { %v1692_v15 = vpop.eup %1691 }
 0x11b   : > { %v1694_v16 = vpop.eup %1693 }
 0x11c   : > { %1501 = vmatprep.mubr.msk.f32.mxu1 %vm402_vm0, %v1694_v16 }
 0x11d   : > { %1502 = vmatmul.mubr.msk.f32.gmra.mrb[14].mxu1 %vm402_vm0, %v1692_v15 }
 0x11e   : > { %1564 = vmatprep.mubr.msk.f32.mxu1 %vm1792_vm2, %v1793_v51 }
 0x185   : > { %v1056_v53 = vpop.permute.xlu0 %1055 }
 0x1d4   : > { %v1482_v18 = vpop.f32.mrb[0].mxu1 }
 0x1d5   : > { %v743_v19 = vadd.f32 %v1482_v18, %v1311_v17  ;;  %v737_v20 = vpop.f32.mrb[1].mxu1 }
 0x1d6   : > { %v738_v21 = vadd.f32 %v1311_v17, %v737_v20 }
 0x1d7   : > { %818 = vst.msk [vmem:[%s2020_s22 + $0x8] sm:$0xff] %vm816_vm1, %v743_v19 }
 0x1d8   : > { %817 = vst.msk [vmem:[%s2020_s22] sm:$0xff] %vm816_vm1, %v738_v21  ;;  %v1485_v22 = vpop.f32.mrb[2].mxu1  ;;  %1508 = vmatprep.mubr.msk.f32.mxu0 %vm816_vm1, %v738_v21 }
 0x1d9   : > { %v753_v23 = vadd.f32 %v1485_v22, %v1311_v17  ;;  %v747_v24 = vpop.f32.mrb[3].mxu1  ;;  %1509 = vmatmul.mubr.msk.f32.vlgmr.msra.gmra.mrb[16].mxu0 %vm816_vm1, %v743_v19 }
 0x1da   : > { %v748_v25 = vadd.f32 %v1311_v17, %v747_v24 }
 0x1db   : > { %820 = vst.msk [vmem:[%s2020_s22 + $0x18] sm:$0xff] %vm816_vm1, %v753_v23 }
 0x1dc   : > { %819 = vst.msk [vmem:[%s2020_s22 + $0x10] sm:$0xff] %vm816_vm1, %v748_v25  ;;  %1511 = vmatprep.mubr.msk.f32.mxu0 %vm816_vm1, %v748_v25  ;;  %v1488_v26 = vpop.f32.mrb[4].mxu1 }
 0x1dd   : > { %1512 = vmatmul.mubr.msk.f32.gmra.mrb[18].mxu0 %vm816_vm1, %v753_v23  ;;  %v763_v27 = vadd.f32 %v1488_v26, %v1311_v17  ;;  %v757_v28 = vpop.f32.mrb[5].mxu1 }
 0x1de   : > { %v758_v29 = vadd.f32 %v1311_v17, %v757_v28 }
 0x1df   : > { %822 = vst.msk [vmem:[%s2020_s22 + $0x28] sm:$0xff] %vm816_vm1, %v763_v27 }
 0x1e0   : > { %821 = vst.msk [vmem:[%s2020_s22 + $0x20] sm:$0xff] %vm816_vm1, %v758_v29  ;;  %1514 = vmatprep.mubr.msk.f32.mxu0 %vm816_vm1, %v758_v29  ;;  %v1491_v30 = vpop.f32.mrb[6].mxu1 }
 0x1e1   : > { %1515 = vmatmul.mubr.msk.f32.gmra.mrb[20].mxu0 %vm816_vm1, %v763_v27  ;;  %v773_v31 = vadd.f32 %v1491_v30, %v1311_v17  ;;  %v767_v32 = vpop.f32.mrb[7].mxu1 }
 0x1e2   : > { %v768_v33 = vadd.f32 %v1311_v17, %v767_v32 }
 0x1e3   : > { %824 = vst.msk [vmem:[%s2020_s22 + $0x38] sm:$0xff] %vm816_vm1, %v773_v31 }
 0x1e4   : > { %823 = vst.msk [vmem:[%s2020_s22 + $0x30] sm:$0xff] %vm816_vm1, %v768_v33  ;;  %1517 = vmatprep.mubr.msk.f32.mxu0 %vm816_vm1, %v768_v33  ;;  %v1494_v34 = vpop.f32.mrb[8].mxu1 }
 0x1e5   : > { %1518 = vmatmul.mubr.msk.f32.gmra.mrb[22].mxu0 %vm816_vm1, %v773_v31  ;;  %v783_v35 = vadd.f32 %v1494_v34, %v1311_v17  ;;  %v777_v36 = vpop.f32.mrb[9].mxu1 }
 0x1e6   : > { %v778_v37 = vadd.f32 %v1311_v17, %v777_v36 }
 0x1e7   : > { %826 = vst.msk [vmem:[%s2020_s22 + $0x48] sm:$0xff] %vm816_vm1, %v783_v35 }
 0x1e8   : > { %825 = vst.msk [vmem:[%s2020_s22 + $0x40] sm:$0xff] %vm816_vm1, %v778_v37  ;;  %1520 = vmatprep.mubr.msk.f32.mxu0 %vm816_vm1, %v778_v37  ;;  %v1497_v38 = vpop.f32.mrb[10].mxu1 }
 0x1e9   : > { %1521 = vmatmul.mubr.msk.f32.gmra.mrb[24].mxu0 %vm816_vm1, %v783_v35  ;;  %v793_v39 = vadd.f32 %v1497_v38, %v1311_v17  ;;  %v787_v40 = vpop.f32.mrb[11].mxu1 }
 0x1ea   : > { %v788_v41 = vadd.f32 %v1311_v17, %v787_v40 }
 0x1eb   : > { %828 = vst.msk [vmem:[%s2020_s22 + $0x58] sm:$0xff] %vm816_vm1, %v793_v39 }
 0x1ec   : > { %827 = vst.msk [vmem:[%s2020_s22 + $0x50] sm:$0xff] %vm816_vm1, %v788_v41  ;;  %1523 = vmatprep.mubr.msk.f32.mxu0 %vm816_vm1, %v788_v41  ;;  %v1500_v42 = vpop.f32.mrb[12].mxu1 }
 0x1ed   : > { %1524 = vmatmul.mubr.msk.f32.gmra.mrb[26].mxu0 %vm816_vm1, %v793_v39  ;;  %v803_v43 = vadd.f32 %v1500_v42, %v1311_v17  ;;  %v797_v44 = vpop.f32.mrb[13].mxu1 }
 0x1ee   : > { %v798_v45 = vadd.f32 %v1311_v17, %v797_v44 }
 0x1ef   : > { %830 = vst.msk [vmem:[%s2020_s22 + $0x68] sm:$0xff] %vm816_vm1, %v803_v43 }
 0x1f0   : > { %829 = vst.msk [vmem:[%s2020_s22 + $0x60] sm:$0xff] %vm816_vm1, %v798_v45  ;;  %1526 = vmatprep.mubr.msk.f32.mxu0 %vm816_vm1, %v798_v45  ;;  %v1503_v46 = vpop.f32.mrb[14].mxu1 }
 0x1f1   : > { %1527 = vmatmul.mubr.msk.f32.gmra.mrb[28].mxu0 %vm816_vm1, %v803_v43  ;;  %v813_v47 = vadd.f32 %v1503_v46, %v1311_v17  ;;  %v807_v48 = vpop.f32.mrb[15].mxu1 }
 0x1f2   : > { %v808_v49 = vadd.f32 %v1311_v17, %v807_v48  ;;  %v1051_v48 = vld [vmem:[%s2179_s7] sm:$0x1] }
 0x1f3   : > { %832 = vst.msk [vmem:[%s2020_s22 + $0x78] sm:$0xff] %vm816_vm1, %v813_v47 }
 0x1f4   : > { %831 = vst.msk [vmem:[%s2020_s22 + $0x70] sm:$0xff] %vm816_vm1, %v808_v49  ;;  %1529 = vmatprep.mubr.msk.f32.mxu0 %vm816_vm1, %v808_v49  ;;  %v1058_v49 = vlaneseq  ;;  %s1727_s22 = scalar_lea.vmem %s2132_s30, 16 }
 0x1f5   : > { %1530 = vmatmul.mubr.msk.f32.gmra.mrb[30].mxu0 %vm816_vm1, %v813_v47  ;;  %p1728_p11 = scmp.ne.s32.totalorder %s2132_s30, %s1727_s22  ;;  %p1735_p1 = scmp.lt.s32.totalorder %s1733_s26, %s1727_s22 }
 0x1f6   : > { %v1059_v51 = vshrl.u32 %v1058_v49, 7 }
 0x1f7   : > { %p1729_p12 = pnand %p1728_p11, %p1889_p5  ;;  %p1736_p2 = por %p1735_p1, %p1734_p0 }
 0x1f8   : > { %v1060_v52 = vsub.s32 0, %v1059_v51 }
 0x1f9   : > { %p1730_p13 = pneg %p1729_p12 }
 0x1fb   : > { %p1737_p3 = pnand %p1736_p2, %p1730_p13 }
 0x2ac   : > { %v1510_v55 = vpop.f32.mrb[16].mxu0 }
 0x2ad   : > { %v962_v56 = vadd.f32 %v1510_v55, %v2074_v54  ;;  %v956_v57 = vpop.f32.mrb[17].mxu0 }
 0x2ae   : > { %v957_v58 = vadd.f32 %v2074_v54, %v956_v57 }
 0x2af   : > { %1695 = vtanh.f32 %v962_v56 }
 0x2b0   : > { %1697 = vtanh.f32 %v957_v58  ;;  %v1513_v59 = vpop.f32.mrb[18].mxu0 }
 0x2b1   : > { %v972_v60 = vadd.f32 %v1513_v59, %v2074_v54  ;;  %v966_v61 = vpop.f32.mrb[19].mxu0 }
 0x2b2   : > { %v967_v62 = vadd.f32 %v2074_v54, %v966_v61 }
 0x2b3   : > { %1699 = vtanh.f32 %v972_v60 }
 0x2b4   : > { %1701 = vtanh.f32 %v967_v62  ;;  %v1516_v63 = vpop.f32.mrb[20].mxu0 }
 0x2b5   : > { %v982_v0 = vadd.f32 %v1516_v63, %v2074_v54  ;;  %v976_v1 = vpop.f32.mrb[21].mxu0 }
 0x2b6   : > { %v977_v2 = vadd.f32 %v2074_v54, %v976_v1 }
 0x2b7   : > { %1703 = vtanh.f32 %v982_v0 }
 0x2b8   : > { %1705 = vtanh.f32 %v977_v2  ;;  %v1519_v3 = vpop.f32.mrb[22].mxu0 }
 0x2b9   : > { %v1696_v4 = vpop.eup %1695  ;;  %v992_v5 = vadd.f32 %v1519_v3, %v2074_v54  ;;  %v986_v6 = vpop.f32.mrb[23].mxu0 }
 0x2ba   : > { %v1698_v7 = vpop.eup %1697  ;;  %v987_v9 = vadd.f32 %v2074_v54, %v986_v6 }
 0x2bb   : > { %v1588_v10 = vpack.c.bf16 %v1696_v4, %v1698_v7  ;;  %1707 = vtanh.f32 %v992_v5 }
 0x2bc   : > { %1709 = vtanh.f32 %v987_v9  ;;  %v1522_v11 = vpop.f32.mrb[24].mxu0 }
 0x2bd   : > { %v1700_v12 = vpop.eup %1699  ;;  %1590 = vmatpush3.bf16.xpose.msk.msra.mxu1 %vm2085_vm3, %v1588_v10  ;;  %v1002_v13 = vadd.f32 %v1522_v11, %v2074_v54  ;;  %v996_v14 = vpop.f32.mrb[25].mxu0 }
 0x2be   : > { %v1702_v15 = vpop.eup %1701  ;;  %1591 = vmatprep.subr.bf16.mxu1 %v1791_v50  ;;  %v997_v16 = vadd.f32 %v2074_v54, %v996_v14 }
 0x2bf   : > { %v1592_v17 = vpack.c.bf16 %v1700_v12, %v1702_v15  ;;  %1711 = vtanh.f32 %v1002_v13 }
 0x2c0   : > { %1713 = vtanh.f32 %v997_v16  ;;  %v1525_v18 = vpop.f32.mrb[26].mxu0 }
 0x2c1   : > { %v1704_v19 = vpop.eup %1703  ;;  %v1012_v20 = vadd.f32 %v1525_v18, %v2074_v54  ;;  %v1006_v21 = vpop.f32.mrb[27].mxu0 }
 0x2c2   : > { %v1706_v22 = vpop.eup %1705  ;;  %v1007_v23 = vadd.f32 %v2074_v54, %v1006_v21 }
 0x2c3   : > { %v1596_v24 = vpack.c.bf16 %v1704_v19, %v1706_v22  ;;  %1715 = vtanh.f32 %v1012_v20 }
 0x2c4   : > { %1717 = vtanh.f32 %v1007_v23  ;;  %v1528_v25 = vpop.f32.mrb[28].mxu0 }
 0x2c5   : > { %v1708_v26 = vpop.eup %1707  ;;  %1594 = vmatpush3.bf16.xpose.msk.msra.mxu1 %vm2085_vm3, %v1592_v17  ;;  %v1022_v27 = vadd.f32 %v1528_v25, %v2074_v54  ;;  %v1016_v28 = vpop.f32.mrb[29].mxu0 }
 0x2c6   : > { %v1710_v29 = vpop.eup %1709  ;;  %1595 = vmatprep.subr.bf16.mxu1 %v1791_v50  ;;  %v1017_v30 = vadd.f32 %v2074_v54, %v1016_v28 }
 0x2c7   : > { %v1600_v31 = vpack.c.bf16 %v1708_v26, %v1710_v29  ;;  %1719 = vtanh.f32 %v1022_v27 }
 0x2c8   : > { %1721 = vtanh.f32 %v1017_v30  ;;  %v1531_v32 = vpop.f32.mrb[30].mxu0 }
 0x2c9   : > { %v1712_v33 = vpop.eup %1711  ;;  %v1032_v34 = vadd.f32 %v1531_v32, %v2074_v54  ;;  %v1026_v35 = vpop.f32.mrb[31].mxu0 }
 0x2ca   : > { %v1714_v36 = vpop.eup %1713  ;;  %v1027_v37 = vadd.f32 %v2074_v54, %v1026_v35  ;;  %v1061_v54 = vrot.slane %v1056_v53, %v1060_v52 }
 0x2cb   : > { %v1604_v38 = vpack.c.bf16 %v1712_v33, %v1714_v36  ;;  %1723 = vtanh.f32 %v1032_v34 }
 0x2cc   : > { %1725 = vtanh.f32 %v1027_v37 }
 0x2cd   : > { %v1716_v39 = vpop.eup %1715  ;;  %1598 = vmatpush3.bf16.xpose.msk.msra.mxu1 %vm2085_vm3, %v1596_v24 }
 0x2ce   : > { %v1718_v40 = vpop.eup %1717  ;;  %1599 = vmatprep.subr.bf16.mxu1 %v1791_v50 }
 0x2cf   : > { %v1608_v41 = vpack.c.bf16 %v1716_v39, %v1718_v40 }
 0x2d1   : > { %v1720_v42 = vpop.eup %1719 }
 0x2d2   : > { %v1722_v43 = vpop.eup %1721 }
 0x2d3   : > { %v1612_v44 = vpack.c.bf16 %v1720_v42, %v1722_v43 }
 0x2d5   : > { %v1724_v45 = vpop.eup %1723  ;;  %1602 = vmatpush3.bf16.xpose.msk.msra.mxu1 %vm2085_vm3, %v1600_v31 }
 0x2d6   : > { %v1726_v46 = vpop.eup %1725  ;;  %1603 = vmatprep.subr.bf16.mxu1 %v1791_v50 }
 0x2d7   : > { %v1616_v47 = vpack.c.bf16 %v1724_v45, %v1726_v46 }
 0x2dd   : > { %1606 = vmatpush3.bf16.xpose.msk.msra.mxu1 %vm2085_vm3, %v1604_v38 }
 0x2de   : > { %1607 = vmatprep.subr.bf16.mxu1 %v1791_v50 }
 0x2e5   : > { %1610 = vmatpush3.bf16.xpose.msk.msra.mxu1 %vm2085_vm3, %v1608_v41 }
 0x2e6   : > { %1611 = vmatprep.subr.bf16.mxu1 %v1791_v50 }
 0x2ed   : > { %1614 = vmatpush3.bf16.xpose.msk.msra.mxu1 %vm2085_vm3, %v1612_v44 }
 0x2ee   : > { %1615 = vmatprep.subr.bf16.mxu1 %v1791_v50 }
 0x2f5   : > { %1618 = vmatpush3.bf16.xpose.msk.msra.mxu1 %vm2085_vm3, %v1616_v47 }
 0x2fc   : > { %1565 = vmatmul.mubr.msk.f32.vlgmr.msra.gmra.mrb[16].mxu1 %vm402_vm0, %v1051_v48 }
 0x3cf   : > { %v1179_v55 = vpop.f32.mrb[16].mxu1 }
 0x3d0   : > { %v1180_v50 = vadd.f32 %v1179_v55, %v1061_v54  ;;  %v1566_v56 = vpop.f32.mrb[17].mxu1 }
 0x3d2   : > { %1183 = vst [vmem:[%s362_s29] sm:$0x1] %v1180_v50 }
 0x3d3   : > { %1740 = shalt.err (!%p1737_p3)
}
 0x3d4   : > { %s1741_s12 = scalar_lea.hbm %s2130_s14, 16  ;;  %s1745_s29 = scalar_lea.hbm %s2182_s10, 32 }
 0x3d5   : > { %p1742_p4 = scmp.ne.s32.totalorder %s2130_s14, %s1741_s12  ;;  %p1746_p9 = scmp.lt.u32.totalorder %s2130_s14, %s2182_s10 }
 0x3d6   : > { %p1747_p10 = scmp.lt.u32.totalorder %s1745_s29, %s1741_s12  ;;  %p1749_p12 = scmp.lt.u32.totalorder %s1741_s12, %s2130_s14 }
 0x3d7   : > { %p1743_p7 = pnand %p1742_p4, %p1889_p5 }
 0x3d8   : > { %p1748_p11 = por %p1747_p10, %p1746_p9 }
 0x3d9   : > { %p1744_p8 = pneg %p1743_p7 }
 0x3da   : > { %p1750_p13 = por %p1749_p12, %p1748_p11 }
 0x3dc   : > { %p1751_p0 = pnand %p1750_p13, %p1744_p8 }
 0x3de   : > { %1754 = shalt.err (!%p1751_p0)
}
 0x3df   : > { %1619 = dma.vmem_to_hbm [thread:$0]  (%p1889_p5), %s2132_s30, 16, %s2130_s14, %s1190_s8  }
 0x3e0 PF: > { %p1625_p1 = scmp.ge.s32.totalorder %s1789_s18, 2  ;;  %s1226_s22 = sand.u32 1, %s1777_s15  }
 0x3e1   : > { %s1227_s19 = scalar_lea.sflag [#allocation4], %s1226_s22 }
 0x3e2   : > { %p1622_p2 = pnand %p1625_p1, %p1893_p6 }
 0x3e4   : > { %1772 = dma.done.wait (!%p1622_p2), %s1227_s19, 16  }
 0x3e5   : > { %1774 = vsyncadd (!%p1622_p2), %s1227_s19, 4294967280  ;;  %p23_p3 = scmp.ge.s32.totalorder %s1877_s20, 4   ;;  %s2187_s15 = smov %s1781_s16 }
 0x3e6   : > { %s2188_s16 = smov %s1785_s17  ;;  %s2189_s17 = smov %s1887_s23 }
 0x3e7   : > { %s2190_s18 = smov %s1877_s20  ;;  %25 = sbr.rel (!%p23_p3) target bundleno = 6 (0x6), region = 103 }
 0x3ee   :  { %1231 = vsyncpa [#allocation4], 1 }
 0x3ef   :  { %1233 = vsyncpa [#allocation4 + $0x1], 1 }

</bundles_post_ra>
